<compile_context>
chip_gen: v7x
topology: tpu7x:2x2x1
jax: 0.10.0
libtpu: 0.0.40
codegen_flags: <defaults>
</compile_context>

<pallas_src>
import functools

import jax
import jax.numpy as jnp
from jax.experimental import pallas as pl
from jax.experimental.pallas import tpu as pltpu


_TM_TARGET = 512                      # target M-tile (patch rows)
_VMEM_BUDGET = 24 * 1024 * 1024       # double-buffered working-set target
_VMEM_LIMIT = 32 * 1024 * 1024        # scoped-VMEM limit handed to Mosaic


def _ceil_to(x, m):
    return ((x + m - 1) // m) * m


def _pick_tiles(M, K, E_pad, itemsize):
    """Pick (tm, tn) with tn | E_pad and the double-buffered tile set in budget."""
    m_align = {4: 8, 2: 16, 1: 32}.get(itemsize, 8)

    def vmem_bytes(tm, tn):
        # 2x double-buffering of patches / weight / bias / output tiles.
        return 2 * (tm * K + K * tn + tn + tm * tn) * itemsize

    tm_max = min(_TM_TARGET, _ceil_to(M, m_align))
    tm_min = min(tm_max, 128)

    # tn must be a multiple of 128 (lane-dense stores) and divide E_pad
    # (no E over-padding).  Prefer the largest tn, i.e. tn == E_pad.
    q = E_pad // 128
    tm, tn = tm_min, 128
    for cand in sorted((128 * d for d in range(1, q + 1) if q % d == 0),
                       reverse=True):
        t = tm_max
        while t > tm_min and vmem_bytes(t, cand) > _VMEM_BUDGET:
            t = max(tm_min, _ceil_to(t // 2, m_align))
        if vmem_bytes(t, cand) <= _VMEM_BUDGET:
            tm, tn = t, cand
            break

    # v7x has two TensorCores: keep at least two parallel M tiles when M is
    # big enough to matter (harmless on v5e/v6e).
    if M > 128 and pl.cdiv(M, tm) < 2:
        tm = _ceil_to(pl.cdiv(M, 2), m_align)
    return tm, tn


def patch_embed_kernel(x_ref, w_ref, b_ref, o_ref):
    # x_ref: (tm, K) patch rows; w_ref: (K, tn) weight slab; b_ref: (1, tn).
    o_ref[...] = (
        jnp.dot(x_ref[...], w_ref[...], preferred_element_type=jnp.float32)
        + b_ref[...]
    ).astype(o_ref.dtype)


@functools.partial(jax.jit, static_argnums=(3,), static_argnames=("compute_dtype",))
def patch_embed(x_nchw, conv_weight, conv_bias, patch_size, *, compute_dtype=None):
    """x_nchw: (B, C, H, W); conv_weight: (E, C, p, p); conv_bias: (E,)."""
    B, C, H, W = x_nchw.shape
    E = conv_weight.shape[0]
    p = patch_size
    assert H % p == 0 and W % p == 0
    gh, gw = H // p, W // p
    num_patches = gh * gw

    cdt = jnp.dtype(compute_dtype) if compute_dtype is not None else jnp.dtype(x_nchw.dtype)

    # Patch extraction (layout glue):
    # (B, C, gh, p, gw, p) -> (B, gh, gw, C, p, p) -> (M, K).
    # allow_input_fusion below lets XLA fold this transpose into the pallas
    # input copy instead of materializing an (M, K) HBM buffer.
    patches = x_nchw.reshape(B, C, gh, p, gw, p)
    patches = jnp.transpose(patches, (0, 2, 4, 1, 3, 5))
    patches = patches.reshape(B * num_patches, C * p * p).astype(cdt)

    # Conv weight (E, C, p, p) -> (K, E); flatten order matches the patch rows.
    w = conv_weight.reshape(E, C * p * p).T.astype(cdt)
    b = conv_bias.astype(jnp.float32).reshape(1, E)

    M, K = patches.shape

    # Padding policy:
    #   * E: only up to the 128-lane boundary (for ViT-B E=768 this is a no-op).
    #   * K: none — full-dim blocks (zero-pad would only waste HBM traffic).
    #   * M: none — cdiv grid with a masked edge tile; junk rows in the edge
    #     input block only produce output rows that are never stored.
    E_pad = _ceil_to(E, 128)
    if E_pad != E:
        w = jnp.pad(w, ((0, 0), (0, E_pad - E)))
        b = jnp.pad(b, ((0, 0), (0, E_pad - E)))

    tm, tn = _pick_tiles(M, K, E_pad, cdt.itemsize)
    n_e = E_pad // tn
    n_m = pl.cdiv(M, tm)

    out = pl.pallas_call(
        patch_embed_kernel,
        out_shape=jax.ShapeDtypeStruct((M, E_pad), x_nchw.dtype),
        grid_spec=pl.GridSpec(
            # M is the fastest-varying (last) grid axis and the weight/bias
            # index_maps ignore it, so the (K, tn) weight slab stays resident
            # in VMEM across all M tiles (no per-tile weight re-DMA).
            grid=(n_e, n_m),
            in_specs=[
                pl.BlockSpec((tm, K), lambda j, i: (i, 0)),     # patches
                pl.BlockSpec((K, tn), lambda j, i: (0, j)),     # weight
                pl.BlockSpec((1, tn), lambda j, i: (0, j)),     # bias
            ],
            out_specs=pl.BlockSpec((tm, tn), lambda j, i: (i, j)),
        ),
        compiler_params=pltpu.CompilerParams(
            dimension_semantics=("parallel", "parallel"),
            vmem_limit_bytes=_VMEM_LIMIT,
            # Let XLA fuse the patch-gather transpose into the pallas input
            # copy for the patches operand (weight/bias stay materialized).
            allow_input_fusion=[True, False, False],
        ),
    )(patches, w, b)

    if E_pad != E:
        out = out[:, :E]
    return out.reshape(B, num_patches, E)


def reference_patch_embed(x_nchw, conv_weight, conv_bias, patch_size):
    # Pure-JAX reference: conv2d with stride == kernel_size, then flatten+transpose.
    y = jax.lax.conv_general_dilated(
        x_nchw, conv_weight,
        window_strides=(patch_size, patch_size),
        padding="VALID",
        dimension_numbers=("NCHW", "OIHW", "NCHW"),
    )
    y = y + conv_bias[None, :, None, None]
    B, E, gh, gw = y.shape
    return jnp.transpose(y.reshape(B, E, gh * gw), (0, 2, 1))


if __name__ == "__main__":
    # Small shapes consistent with the module: img_size=16, patch_size=4,
    # in_chans=4, embed_dim=32 -> num_patches = 16.
    B, C, H, W = 2, 4, 16, 16
    p = 4
    E = 32

    key = jax.random.PRNGKey(0)
    k_x, k_w, k_b = jax.random.split(key, 3)
    x = jax.random.normal(k_x, (B, C, H, W), dtype=jnp.float32)
    conv_weight = jax.random.normal(k_w, (E, C, p, p), dtype=jnp.float32) * 0.02
    conv_bias = jax.random.normal(k_b, (E,), dtype=jnp.float32) * 0.02

    out = patch_embed(x, conv_weight, conv_bias, p)
    out = jax.block_until_ready(out)

    ref = reference_patch_embed(x, conv_weight, conv_bias, p)
    assert out.shape == (B, (H // p) * (W // p), E), out.shape
    assert jnp.allclose(out, ref, atol=1e-4, rtol=1e-4), "mismatch vs reference"

    print("KERNEL_OK")
</pallas_src>

<mosaic_0001>
module attributes {stable_mosaic.version = 11 : i64} {
  func.func @patch_embed_kernel(%arg0: i32, %arg1: i32, %arg2: memref<32x64xf32, #tpu.memory_space<vmem>>, %arg3: memref<64x128xf32, #tpu.memory_space<vmem>>, %arg4: memref<1x128xf32, #tpu.memory_space<vmem>>, %arg5: memref<32x128xf32, #tpu.memory_space<vmem>>) attributes {dimension_semantics = [#tpu.dimension_semantics<parallel>, #tpu.dimension_semantics<parallel>], iteration_bounds = array<i64: 1, 1>, scalar_prefetch = 0 : i64, scratch_operands = 0 : i64, tpu.core_type = #tpu.core_type<tc>, window_params = [{transform_indices = @transform_0, window_bounds = array<i64: 32, 64>}, {transform_indices = @transform_1, window_bounds = array<i64: 64, 128>}, {transform_indices = @transform_2, window_bounds = array<i64: 1, 128>}, {transform_indices = @transform_3, window_bounds = array<i64: 32, 128>}]} {
    %c0 = arith.constant 0 : index
    %c0_0 = arith.constant 0 : index
    %0 = vector.load %arg2[%c0, %c0_0] : memref<32x64xf32, #tpu.memory_space<vmem>>, vector<32x64xf32>
    %c0_1 = arith.constant 0 : index
    %c0_2 = arith.constant 0 : index
    %1 = vector.load %arg3[%c0_1, %c0_2] : memref<64x128xf32, #tpu.memory_space<vmem>>, vector<64x128xf32>
    %cst = arith.constant dense<0.000000e+00> : vector<32x128xf32>
    %2 = tpu.matmul %0, %1, %cst {dimension_numbers = #tpu.dot_dimension_numbers<[1], [0], [0], [1], [0, 0, 1, 1], [], []>} : vector<32x64xf32>, vector<64x128xf32>, vector<32x128xf32> -> vector<32x128xf32>
    %c0_3 = arith.constant 0 : index
    %c0_4 = arith.constant 0 : index
    %3 = vector.load %arg4[%c0_3, %c0_4] : memref<1x128xf32, #tpu.memory_space<vmem>>, vector<1x128xf32>
    %4 = vector.broadcast %3 : vector<1x128xf32> to vector<32x128xf32>
    %5 = arith.addf %2, %4 : vector<32x128xf32>
    %c0_5 = arith.constant 0 : index
    %c0_6 = arith.constant 0 : index
    %6 = vector.load %arg5[%c0_5, %c0_6] : memref<32x128xf32, #tpu.memory_space<vmem>>, vector<32x128xf32>
    tpu.vector_store %arg5[%c0_5, %c0_6], %5 {strides = array<i32>} : memref<32x128xf32, #tpu.memory_space<vmem>>, vector<32x128xf32>,
    return
  }
  func.func @transform_0(%arg0: i32, %arg1: i32) -> (i32, i32) {
    %c0_i32 = arith.constant 0 : i32
    %c0_i32_0 = arith.constant 0 : i32
    return %arg1, %c0_i32 : i32, i32
  }
  func.func @transform_1(%arg0: i32, %arg1: i32) -> (i32, i32) {
    %c0_i32 = arith.constant 0 : i32
    %c0_i32_0 = arith.constant 0 : i32
    return %c0_i32, %arg0 : i32, i32
  }
  func.func @transform_2(%arg0: i32, %arg1: i32) -> (i32, i32) {
    %c0_i32 = arith.constant 0 : i32
    %c0_i32_0 = arith.constant 0 : i32
    return %c0_i32, %arg0 : i32, i32
  }
  func.func @transform_3(%arg0: i32, %arg1: i32) -> (i32, i32) {
    %c0_i32 = arith.constant 0 : i32
    return %arg1, %arg0 : i32, i32
  }
}

</mosaic_0001>

<bundles_post_ra>
// kernel: patch_embed.1
= control target key start
LH: loop header
LB: loop body
LE: loop exit
PB: predicated region body
PF: predicated region fallthrough
CT: control target
= control target key end

     0   :  { %vm34_vm0 = vcmask 523264   ;;  %s320_s0 = inlined_call_operand.vmem [shape: f32[32,64], index: 0, kind: input, shape index: {}]   ;;  %s321_s1 = inlined_call_operand.vmem [shape: f32[64,128], index: 1, kind: input, shape index: {}]   ;;  %s322_s2 = inlined_call_operand.vmem [shape: f32[1,128], index: 2, kind: input, shape index: {}]   ;;  %s323_s3 = inlined_call_operand.hbm [shape: f32[32,128], index: 3, kind: output, shape index: {}]  }
   0x1   :  { %v19_v0 = vld [vmem:[%s321_s1] sm:$0xff]  ;;  %v20_v1 = vld [vmem:[%s321_s1 + $0x8] sm:$0xff]  ;;  %v21_v2 = vld [vmem:[%s321_s1 + $0x10] sm:$0xff] }
   0x2   :  { %v191_v3 = vpack.c.bf16 %v20_v1, %v19_v0  ;;  %v22_v4 = vld [vmem:[%s321_s1 + $0x18] sm:$0xff]  ;;  %v23_v6 = vld [vmem:[%s321_s1 + $0x20] sm:$0xff]  ;;  %v24_v7 = vld [vmem:[%s321_s1 + $0x28] sm:$0xff] }
   0x3   :  { %v195_v5 = vpack.c.bf16 %v22_v4, %v21_v2  ;;  %v15_v8 = vld [vmem:[%s320_s0] sm:$0xff]  ;;  %v17_v9 = vld [vmem:[%s320_s0 + $0x10] sm:$0xff] }
   0x4   :  { %192 = vmatprep.subr.bf16.mxu0 %v191_v3  ;;  %207 = vmatprep.subr.bf16.mxu1 %v191_v3 }
   0x5   :  { %194 = vmatpush3.bf16.msra.mxu0 %v191_v3  ;;  %211 = vmatpush3.bf16.msra.mxu1 %v191_v3 }
   0x6   :  { %8 = vsyncpa [#allocation3], 0  ;;  %196 = vmatprep.subr.bf16.mxu0 %v195_v5  ;;  %208 = vmatprep.subr.bf16.mxu1 %v195_v5  ;;  %v199_v10 = vpack.c.bf16 %v24_v7, %v23_v6  ;;  %v25_v11 = vld [vmem:[%s321_s1 + $0x30] sm:$0xff]  ;;  %v26_v12 = vld [vmem:[%s321_s1 + $0x38] sm:$0xff]  ;;  %s242_s10 = smov [#allocation2]  }
   0x7   :  { %185 = vmatprep.mubr.msk.f32.mxu0 %vm34_vm0, %v15_v8  ;;  %188 = vmatprep.mubr.msk.f32.mxu1 %vm34_vm0, %v17_v9  ;;  %v203_v13 = vpack.c.bf16 %v26_v12, %v25_v11  ;;  %v16_v14 = vld [vmem:[%s320_s0 + $0x8] sm:$0xff]  ;;  %v18_v15 = vld [vmem:[%s320_s0 + $0x18] sm:$0xff]  ;;  %v152_v16 = vld [vmem:[%s322_s2] ss:$0 sm:$0xff]  ;;  %s141_s11 = sshll.u32 %s242_s10, 4  ;;  %s142_s11 = int_to_ptr.vmem [resolvable:$true] %s141_s11 }
   0x8   :  { %s218_s0 = scalar_lea.vmem %s142_s11, 512  ;;  %p223_p1 = scmp.lt.s32.totalorder %s142_s11, %s142_s11 }
   0x9   :  { %198 = vmatpush3.bf16.msra.mxu0 %v195_v5  ;;  %212 = vmatpush3.bf16.msra.mxu1 %v195_v5  ;;  %p219_p0 = scmp.ne.s32.totalorder %s142_s11, %s218_s0  ;;  %p224_p2 = scmp.lt.s32.totalorder %s218_s0, %s218_s0 }
   0xa   :  { %200 = vmatprep.subr.bf16.mxu0 %v199_v10  ;;  %209 = vmatprep.subr.bf16.mxu1 %v199_v10 }
   0xb   :  { %p225_p3 = por %p224_p2, %p223_p1 }
   0xd   :  { %202 = vmatpush3.bf16.msra.mxu0 %v199_v10  ;;  %213 = vmatpush3.bf16.msra.mxu1 %v199_v10  ;;  %p226_p4 = pnand %p225_p3, %p219_p0 }
   0xe   :  { %204 = vmatprep.subr.bf16.mxu0 %v203_v13  ;;  %210 = vmatprep.subr.bf16.mxu1 %v203_v13 }
  0x11   :  { %206 = vmatpush3.bf16.msra.mxu0 %v203_v13  ;;  %214 = vmatpush3.bf16.msra.mxu1 %v203_v13 }
  0x14   :  { %186 = vmatmul.mubr.msk.f32.vlgmr.msra.gmra.mrb[0].mxu0 %vm34_vm0, %v16_v14  ;;  %189 = vmatmul.mubr.msk.f32.vlgmr.msra.gmra.mrb[0].mxu1 %vm34_vm0, %v18_v15 }
  0xe7   :  { %v187_v17 = vpop.f32.mrb[0].mxu0  ;;  %v190_v18 = vpop.f32.mrb[0].mxu1 }
  0xe8   :  { %v119_v19 = vadd.f32 %v187_v17, %v152_v16  ;;  %v129_v20 = vadd.f32 %v190_v18, %v152_v16  ;;  %v113_v21 = vpop.f32.mrb[1].mxu0  ;;  %v123_v22 = vpop.f32.mrb[1].mxu1 }
  0xe9   :  { %v114_v23 = vadd.f32 %v152_v16, %v113_v21  ;;  %v124_v24 = vadd.f32 %v152_v16, %v123_v22 }
  0xea   :  { %133 = vst [vmem:[#allocation2 + $0x8] sm:$0xff] %v119_v19  ;;  %135 = vst [vmem:[#allocation2 + $0x18] sm:$0xff] %v129_v20 }
  0xeb   :  { %132 = vst [vmem:[#allocation2] sm:$0xff] %v114_v23  ;;  %134 = vst [vmem:[#allocation2 + $0x10] sm:$0xff] %v124_v24 }
  0xec   :  { %229 = shalt.err (!%p226_p4)
}
  0xed   :  { %s230_s13 = scalar_lea.hbm %s323_s3, 512 }
  0xee   :  { %p231_p5 = scmp.ne.s32.totalorder %s323_s3, %s230_s13  ;;  %p234_p6 = scmp.lt.u32.totalorder %s230_s13, %s323_s3 }
  0xf0   :  { %p236_p7 = pnand %p234_p6, %p231_p5 }
  0xf2   :  { %239 = shalt.err (!%p236_p7)
}
  0xf3   :  { %s243_s18 = smov 128   ;;  %s244_s19 = smov 8  }
  0xf4   :  { %147 = dma.vmem_to_hbm [thread:$0]  %s142_s11, 512, %s323_s3, [#allocation3], %s243_s18, %s243_s18, %s244_s19  }
  0xf5   :  { %240 = dma.done.wait [#allocation3], 512  }
  0xf6   :  { %241 = vsyncadd [#allocation3], 4294966784 }
  0xf7   :  { %151 = vsyncpa [#allocation3], 1 }

</bundles_post_ra>
